<compile_context>
chip_gen: v5e
topology: v5e:2x2
jax: 0.10.0
libtpu: 0.0.40
codegen_flags: <defaults>
</compile_context>

<pallas_src>
import functools
import math

import jax
import jax.numpy as jnp
from jax.experimental import pallas as pl
from jax.experimental.pallas import tpu as pltpu

# ITU-R 601-2 luma weights (same as torchvision rgb_to_grayscale).
_RGB_W = (0.2989, 0.587, 0.114)


def _stencil_core_stacked(x, imgs_per_block, H, o_ref):
    """x: (B*H, W) float32 rows of B stacked single-channel images.

    Computes the 3x3 Laplacian ([[0,1,0],[1,-4,1],[0,1,0]], symmetric so
    cross-correlation == convolution) on the whole stacked block with large
    shifted slices, then stores each image's valid (H-2, W-2) interior.
    Rows that straddle two images only pollute image border rows, which are
    never part of any stored interior.
    """
    vert = x[:-2, :] + x[2:, :]        # above + below neighbours
    horiz = x[:, :-2] + x[:, 2:]       # left + right neighbours
    core = vert[:, 1:-1] + horiz[1:-1, :] - 4.0 * x[1:-1, 1:-1]   # (B*H-2, W-2)
    for b in range(imgs_per_block):
        o_ref[b, :, :] = core[b * H:b * H + H - 2, :].astype(o_ref.dtype)


def _lap_interior(img):
    """img: (H, W) float32 single image -> (H-2, W-2) valid Laplacian."""
    vert = img[:-2, 1:-1] + img[2:, 1:-1]
    horiz = img[1:-1, :-2] + img[1:-1, 2:]
    return vert + horiz - 4.0 * img[1:-1, 1:-1]


def _lap_kernel_gray(x_ref, o_ref, *, imgs_per_block, H):
    # x_ref: (imgs_per_block*H, W); o_ref: (imgs_per_block, H-2, W-2)
    x = x_ref[...].astype(jnp.float32)     # one upcast per tile (bf16-friendly)
    _stencil_core_stacked(x, imgs_per_block, H, o_ref)


def _lap_kernel_rgb(x_ref, o_ref, *, imgs_per_block, H):
    # x_ref: (imgs_per_block*3*H, W) stacked NCHW rows; o_ref: (imgs_per_block, H-2, W-2)
    x = x_ref[...].astype(jnp.float32)
    for b in range(imgs_per_block):
        base = 3 * H * b
        gray = (_RGB_W[0] * x[base:base + H, :]
                + _RGB_W[1] * x[base + H:base + 2 * H, :]
                + _RGB_W[2] * x[base + 2 * H:base + 3 * H, :])
        o_ref[b, :, :] = _lap_interior(gray).astype(o_ref.dtype)


def _pick_block_batch(N, rows_per_img, W, itemsize,
                      target_bytes=4 << 20, max_imgs=64):
    """Images per grid step. Keeps the input block's second-to-last dim a
    multiple of 8 (or the full array), divides N, and caps VMEM per block."""
    g = math.gcd(rows_per_img, 8)
    align = 8 // g                          # b must be a multiple of this
    per_img = max(1, rows_per_img * W * itemsize)
    b = max(1, min(N, max_imgs, target_bytes // per_img))
    while b > 1 and (N % b != 0 or b % align != 0):
        b -= 1
    if b % align != 0 and b != N:
        b = N                               # full-array block is always legal
    return b


def lap_filter_pallas(x, input_channel=1):
    """Forward pass of lap_filter.

    x: (N, C, H, W). Returns (N, 1, H-2, W-2) = valid 3x3 Laplacian of the
    (optionally grayscale-converted) input, matching nn.Conv2d(1,1,3,bias=False)
    with the fixed [[0,1,0],[1,-4,1],[0,1,0]] weight.
    """
    N, C, H, W = x.shape
    if H < 3 or W < 3:
        raise ValueError("lap_filter requires H, W >= 3")
    dtype = x.dtype
    itemsize = jnp.dtype(dtype).itemsize

    if input_channel == 3:
        if C != 3:
            raise ValueError("input_channel=3 expects a 3-channel input")
        rows_per_img = 3 * H
        b = _pick_block_batch(N, rows_per_img, W, itemsize)
        kernel = functools.partial(_lap_kernel_rgb, imgs_per_block=b, H=H)
    else:
        if C != 1:
            raise ValueError("the Laplacian conv expects a single channel")
        rows_per_img = H
        b = _pick_block_batch(N, rows_per_img, W, itemsize)
        kernel = functools.partial(_lap_kernel_gray, imgs_per_block=b, H=H)

    # Free (contiguous) reshape: NCHW -> stacked 2-D rows, W on the lane axis.
    x2d = x.reshape(N * rows_per_img, W)

    out = pl.pallas_call(
        kernel,
        out_shape=jax.ShapeDtypeStruct((N, H - 2, W - 2), dtype),
        grid_spec=pltpu.PrefetchScalarGridSpec(
            num_scalar_prefetch=0,
            grid=(N // b,),
            in_specs=[pl.BlockSpec((b * rows_per_img, W), lambda i: (i, 0))],
            out_specs=pl.BlockSpec((b, H - 2, W - 2), lambda i: (i, 0, 0)),
        ),
        compiler_params=pltpu.CompilerParams(
            dimension_semantics=("parallel",),
            vmem_limit_bytes=64 * 1024 * 1024,
        ),
    )(x2d)

    return out[:, None, :, :]


def _reference_conv(x_1ch):
    """Pure-JAX reference: fixed 3x3 Laplacian, VALID conv, NCHW."""
    w = jnp.array([[0.0, 1.0, 0.0],
                   [1.0, -4.0, 1.0],
                   [0.0, 1.0, 0.0]], dtype=x_1ch.dtype)[None, None, :, :]
    return jax.lax.conv_general_dilated(
        x_1ch, w, window_strides=(1, 1), padding="VALID",
        dimension_numbers=("NCHW", "OIHW", "NCHW"))


if __name__ == "__main__":
    key = jax.random.PRNGKey(0)
    k1, k2 = jax.random.split(key)

    # --- single-channel path (module default) ---
    x1 = jax.random.normal(k1, (2, 1, 16, 16), dtype=jnp.float32)
    out1 = jax.block_until_ready(lap_filter_pallas(x1, input_channel=1))
    ref1 = _reference_conv(x1)
    assert out1.shape == (2, 1, 14, 14), out1.shape
    assert jnp.allclose(out1, ref1, atol=1e-4, rtol=1e-4), "gray path mismatch"

    # --- RGB path with fused grayscale conversion ---
    x3 = jax.random.normal(k2, (2, 3, 16, 16), dtype=jnp.float32)
    out3 = jax.block_until_ready(lap_filter_pallas(x3, input_channel=3))
    wrgb = jnp.array(_RGB_W, dtype=jnp.float32)
    gray_ref = jnp.einsum("nchw,c->nhw", x3, wrgb)[:, None, :, :]
    ref3 = _reference_conv(gray_ref)
    assert out3.shape == (2, 1, 14, 14), out3.shape
    assert jnp.allclose(out3, ref3, atol=1e-4, rtol=1e-4), "rgb path mismatch"

    print("KERNEL_OK")
</pallas_src>

<mosaic_0001>
module attributes {stable_mosaic.version = 11 : i64} {
  func.func @_lap_kernel_gray(%arg0: i32, %arg1: memref<32x16xf32, #tpu.memory_space<vmem>>, %arg2: memref<2x14x14xf32, #tpu.memory_space<vmem>>) attributes {dimension_semantics = [#tpu.dimension_semantics<parallel>], iteration_bounds = array<i64: 1>, scalar_prefetch = 0 : i64, scratch_operands = 0 : i64, tpu.core_type = #tpu.core_type<tc>, window_params = [{transform_indices = @transform_0, window_bounds = array<i64: 32, 16>}, {transform_indices = @transform_1, window_bounds = array<i64: 2, 14, 14>}]} {
    %c0 = arith.constant 0 : index
    %c0_0 = arith.constant 0 : index
    %0 = vector.load %arg1[%c0, %c0_0] : memref<32x16xf32, #tpu.memory_space<vmem>>, vector<32x16xf32>
    %1 = vector.extract_strided_slice %0 {offsets = [0, 0], sizes = [30, 16], strides = [1, 1]} : vector<32x16xf32> to vector<30x16xf32>
    %2 = vector.extract_strided_slice %0 {offsets = [2, 0], sizes = [30, 16], strides = [1, 1]} : vector<32x16xf32> to vector<30x16xf32>
    %3 = arith.addf %1, %2 : vector<30x16xf32>
    %4 = vector.extract_strided_slice %0 {offsets = [0, 0], sizes = [32, 14], strides = [1, 1]} : vector<32x16xf32> to vector<32x14xf32>
    %5 = vector.extract_strided_slice %0 {offsets = [0, 2], sizes = [32, 14], strides = [1, 1]} : vector<32x16xf32> to vector<32x14xf32>
    %6 = arith.addf %4, %5 : vector<32x14xf32>
    %7 = vector.extract_strided_slice %3 {offsets = [0, 1], sizes = [30, 14], strides = [1, 1]} : vector<30x16xf32> to vector<30x14xf32>
    %8 = vector.extract_strided_slice %6 {offsets = [1, 0], sizes = [30, 14], strides = [1, 1]} : vector<32x14xf32> to vector<30x14xf32>
    %9 = arith.addf %7, %8 : vector<30x14xf32>
    %10 = vector.extract_strided_slice %0 {offsets = [1, 1], sizes = [30, 14], strides = [1, 1]} : vector<32x16xf32> to vector<30x14xf32>
    %cst = arith.constant 4.000000e+00 : f32
    %11 = vector.broadcast %cst : f32 to vector<30x14xf32>
    %12 = arith.mulf %11, %10 : vector<30x14xf32>
    %13 = arith.subf %9, %12 : vector<30x14xf32>
    %14 = vector.extract_strided_slice %13 {offsets = [0, 0], sizes = [14, 14], strides = [1, 1]} : vector<30x14xf32> to vector<14x14xf32>
    %c0_1 = arith.constant 0 : index
    %c0_2 = arith.constant 0 : index
    %c0_3 = arith.constant 0 : index
    %15 = vector.load %arg2[%c0_1, %c0_2, %c0_3] : memref<2x14x14xf32, #tpu.memory_space<vmem>>, vector<1x14x14xf32>
    %16 = vector.shape_cast %15 : vector<1x14x14xf32> to vector<14x14xf32>
    %17 = vector.shape_cast %14 : vector<14x14xf32> to vector<1x14x14xf32>
    tpu.vector_store %arg2[%c0_1, %c0_2, %c0_3], %17 {strides = array<i32>} : memref<2x14x14xf32, #tpu.memory_space<vmem>>, vector<1x14x14xf32>,
    %18 = vector.extract_strided_slice %13 {offsets = [16, 0], sizes = [14, 14], strides = [1, 1]} : vector<30x14xf32> to vector<14x14xf32>
    %c1 = arith.constant 1 : index
    %c0_4 = arith.constant 0 : index
    %c0_5 = arith.constant 0 : index
    %19 = vector.load %arg2[%c1, %c0_4, %c0_5] : memref<2x14x14xf32, #tpu.memory_space<vmem>>, vector<1x14x14xf32>
    %20 = vector.shape_cast %19 : vector<1x14x14xf32> to vector<14x14xf32>
    %21 = vector.shape_cast %18 : vector<14x14xf32> to vector<1x14x14xf32>
    tpu.vector_store %arg2[%c1, %c0_4, %c0_5], %21 {strides = array<i32>} : memref<2x14x14xf32, #tpu.memory_space<vmem>>, vector<1x14x14xf32>,
    return
  }
  func.func @transform_0(%arg0: i32) -> (i32, i32) {
    %c0_i32 = arith.constant 0 : i32
    %c0_i32_0 = arith.constant 0 : i32
    return %arg0, %c0_i32 : i32, i32
  }
  func.func @transform_1(%arg0: i32) -> (i32, i32, i32) {
    %c0_i32 = arith.constant 0 : i32
    %c0_i32_0 = arith.constant 0 : i32
    %c0_i32_1 = arith.constant 0 : i32
    return %arg0, %c0_i32, %c0_i32_0 : i32, i32, i32
  }
}

</mosaic_0001>

<bundles_post_ra>
// kernel: tpu_custom_call.1
= control target key start
LH: loop header
LB: loop body
LE: loop exit
PB: predicated region body
PF: predicated region fallthrough
CT: control target
= control target key end

     0   :  { %s131_s10 = smov 126   ;;  %vm52_vm0 = vcmask 1046528   ;;  %s132_s15 = smov 1   ;;  %vm16_vm1 = vcmask 1045504   ;;  %vm107_vm2 = vcmask 113664   ;;  %vm109_vm3 = vcmask 111616   ;;  %s177_s0 = inlined_call_operand.vmem [shape: f32[32,16], index: 0, kind: input, shape index: {}]   ;;  %s178_s1 = inlined_call_operand.vmem [shape: f32[2,14,14], index: 1, kind: output, shape index: {}]  }
   0x1   :  { %v10_v0 = vld [vmem:[%s177_s0 + $0x10] sm:$0xff]  ;;  %v8_v1 = vld [vmem:[%s177_s0] sm:$0xff]  ;;  %v11_v2 = vld [vmem:[%s177_s0 + $0x18] sm:$0xff] }
   0x2   :  { %36 = vrot.lane.b32.xlu1 %v10_v0, %s131_s10  ;;  %32 = vrot.lane.b32.xlu0 %v8_v1, %s131_s10  ;;  %v9_v3 = vld [vmem:[%s177_s0 + $0x8] sm:$0xff]  ;;  %v17_v20 = vrot.slane %v8_v1, 2  ;;  %v76_v22 = vmul.f32 4.0, %v8_v1  ;;  %v20_v27 = vrot.slane %v10_v0, 2  ;;  %v78_v30 = vmul.f32 4.0, %v10_v0  ;;  %s133_s0 = smov 127  }
   0x3   :  { %v18_v19 = vrot.slane %v9_v3, 2  ;;  %v77_v21 = vmul.f32 4.0, %v9_v3  ;;  %v22_v40 = vrot.slane %v11_v2, 2  ;;  %v79_v41 = vmul.f32 4.0, %v11_v2 }
   0x4   :  { %v84_v25 = vrot.slane %v76_v22, 1  ;;  %v87_v34 = vrot.slane %v78_v30, 1 }
   0x5   :  { %v19_v23 = vsel %vm16_vm1, %v17_v20, %v18_v19  ;;  %v85_v24 = vrot.slane %v77_v21, 1  ;;  %v21_v32 = vsel %vm16_vm1, %v18_v19, %v20_v27  ;;  %v23_v42 = vsel %vm16_vm1, %v20_v27, %v22_v40 }
   0x6   :  { %v28_v26 = vadd.f32 %v19_v23, %v8_v1  ;;  %v29_v35 = vadd.f32 %v21_v32, %v9_v3  ;;  %v31_v43 = vadd.f32 %v22_v40, %v11_v2  ;;  %v89_v44 = vrot.slane %v79_v41, 1 }
   0x7   :  { %v86_v29 = vsel %vm52_vm0, %v84_v25, %v85_v24  ;;  %v88_v36 = vsel %vm52_vm0, %v85_v24, %v87_v34  ;;  %v30_v45 = vadd.f32 %v23_v42, %v10_v0 }
   0x8   :  { %v90_v48 = vsel %vm52_vm0, %v87_v34, %v89_v44 }
   0xa   :  { %38 = vrot.lane.b32.xlu1 %v11_v2, %s131_s10  ;;  %34 = vrot.lane.b32.xlu0 %v9_v3, %s131_s10 }
  0x74   :  { %v37_v4 = vpop.permute.xlu1 %36  ;;  %v33_v5 = vpop.permute.xlu0 %32 }
  0x75   :  { %v44_v6 = vadd.f32 %v33_v5, %v8_v1  ;;  %v46_v7 = vadd.f32 %v37_v4, %v10_v0 }
  0x77   :  { %v53_v10 = vrot.slane %v44_v6, 1  ;;  %v56_v13 = vrot.slane %v46_v7, 1 }
  0x7c   :  { %v39_v8 = vpop.permute.xlu1 %38  ;;  %v35_v9 = vpop.permute.xlu0 %34 }
  0x7d   :  { %v47_v11 = vadd.f32 %v39_v8, %v11_v2  ;;  %v45_v12 = vadd.f32 %v35_v9, %v9_v3 }
  0x7f   :  { %v58_v14 = vrot.slane %v47_v11, 1  ;;  %v54_v15 = vrot.slane %v45_v12, 1 }
  0x81   :  { %66 = vrot.lane.b32.xlu1 %v58_v14, %s132_s15  ;;  %v59_v16 = vsel %vm52_vm0, %v56_v13, %v58_v14  ;;  %v55_v17 = vsel %vm52_vm0, %v53_v10, %v54_v15  ;;  %v57_v18 = vsel %vm52_vm0, %v54_v15, %v56_v13 }
  0x82   :  { %64 = vrot.lane.b32.xlu0 %v59_v16, %s132_s15  ;;  %60 = vrot.lane.b32.xlu2 %v55_v17, %s132_s15 }
  0x8a   :  { %62 = vrot.lane.b32.xlu2 %v57_v18, %s132_s15 }
  0xdc   :  { %v61_v28 = vpop.permute.xlu2 %60 }
  0xdd   :  { %v72_v31 = vadd.f32 %v61_v28, %v28_v26 }
  0xdf   :  { %v95_v33 = vsub.f32 %v72_v31, %v86_v29 }
  0xe1   :  { %101 = vrot.lane.b32.xlu2 %v95_v33, %s133_s0 }
  0xe4   :  { %v63_v37 = vpop.permute.xlu2 %62 }
  0xe5   :  { %v73_v38 = vadd.f32 %v63_v37, %v29_v35 }
  0xe7   :  { %v96_v39 = vsub.f32 %v73_v38, %v88_v36 }
  0xe9   :  { %103 = vrot.lane.b32.xlu0 %v96_v39, %s133_s0 }
  0xf3   :  { %v67_v46 = vpop.permute.xlu1 %66 }
  0xf4   :  { %v75_v47 = vadd.f32 %v67_v46, %v31_v43  ;;  %v65_v49 = vpop.permute.xlu0 %64 }
  0xf5   :  { %v74_v50 = vadd.f32 %v65_v49, %v30_v45 }
  0xf6   :  { %v98_v51 = vsub.f32 %v75_v47, %v89_v44 }
  0xf7   :  { %v97_v52 = vsub.f32 %v74_v50, %v90_v48 }
  0xf8   :  { %115 = vrot.lane.b32.xlu2 %v98_v51, %s133_s0 }
  0xf9   :  { %113 = vrot.lane.b32.xlu1 %v97_v52, %s133_s0 }
 0x13b   :  { %v102_v53 = vpop.permute.xlu2 %101 }
 0x13c   :  { %108 = vst.msk [vmem:[%s178_s1] sm:$0xff] %vm107_vm2, %v102_v53 }
 0x152   :  { %v116_v54 = vpop.permute.xlu2 %115 }
 0x153   :  { %127 = vst.msk [vmem:[%s178_s1 + $0x18] sm:$0x3f] %vm109_vm3, %v116_v54 }
 0x15b   :  { %v104_v55 = vpop.permute.xlu0 %103 }
 0x15c   :  { %110 = vst.msk [vmem:[%s178_s1 + $0x8] sm:$0x3f] %vm109_vm3, %v104_v55 }
 0x16b   :  { %v114_v56 = vpop.permute.xlu1 %113 }
 0x16c   :  { %126 = vst.msk [vmem:[%s178_s1 + $0x10] sm:$0xff] %vm107_vm2, %v114_v56 }

</bundles_post_ra>
